<compile_context>
chip_gen: v7x
topology: tpu7x:2x2x1
jax: 0.10.0
libtpu: 0.0.40
codegen_flags: <defaults>
</compile_context>

<pallas_src>
import jax
import jax.numpy as jnp
from jax.experimental import pallas as pl
from jax.experimental.pallas import tpu as pltpu

_TARGET_BLOCK_BYTES = 2 * 1024 * 1024  # ~2 MiB per block: amortizes the
                                       # ~0.35 us/step overhead, fits VMEM
                                       # comfortably on v5e/v6e/v7x.
_VMEM_LIMIT_BYTES = 32 * 1024 * 1024


def _actnorm_kernel(x_ref, loc_ref, scale_ref, o_ref):
    # Pure elementwise; loc/scale broadcast over batch and lane dims.
    o_ref[...] = scale_ref[...] * (x_ref[...] + loc_ref[...])


def _choose_4d_tiles(N, C, HW, itemsize, target_bytes=_TARGET_BLOCK_BYTES):
    """Pick (TN, THW) for a (TN, C, THW) block of roughly `target_bytes`."""
    if HW % 128 == 0:
        # Lane tile: large multiple of 128 (unmasked stores).
        max_lanes = max(128, (target_bytes // max(1, C * itemsize)) // 128 * 128)
        thw = min(HW, max_lanes)
        # Prefer a divisor of HW so every block is full-width (no masked edge).
        while thw > 128 and HW % thw != 0:
            thw -= 128
    else:
        # Fallback: full HW extent (allowed by BlockSpec rules even if <128).
        thw = HW
    per_n = C * thw * itemsize
    tn = max(1, min(N, target_bytes // max(1, per_n)))
    # Prefer a divisor of N to avoid ragged edge blocks.
    while tn > 1 and N % tn != 0:
        tn -= 1
    return tn, thw


def _choose_2d_rows(N, C, itemsize, target_bytes=_TARGET_BLOCK_BYTES):
    if N <= 8:
        return N
    rows = max(8, (target_bytes // max(1, C * itemsize)) // 8 * 8)
    return N if rows >= N else rows


def _actnorm_4d(x, loc, scale):
    N, C, H, W = x.shape
    HW = H * W
    itemsize = jnp.dtype(x.dtype).itemsize

    x_flat = x.reshape(N, C, HW)
    loc_k = loc.reshape(1, C, 1).astype(x.dtype)
    scale_k = scale.reshape(1, C, 1).astype(x.dtype)

    tn, thw = _choose_4d_tiles(N, C, HW, itemsize)
    grid = (pl.cdiv(N, tn), pl.cdiv(HW, thw))

    cost = pl.CostEstimate(
        flops=2 * N * C * HW,
        transcendentals=0,
        bytes_accessed=2 * N * C * HW * itemsize + 2 * C * itemsize,
    )

    out_flat = pl.pallas_call(
        _actnorm_kernel,
        out_shape=jax.ShapeDtypeStruct((N, C, HW), x.dtype),
        grid_spec=pltpu.PrefetchScalarGridSpec(
            num_scalar_prefetch=0,
            grid=grid,
            in_specs=[
                pl.BlockSpec((tn, C, thw), lambda n, hw: (n, 0, hw)),
                pl.BlockSpec((1, C, 1), lambda n, hw: (0, 0, 0)),
                pl.BlockSpec((1, C, 1), lambda n, hw: (0, 0, 0)),
            ],
            out_specs=pl.BlockSpec((tn, C, thw), lambda n, hw: (n, 0, hw)),
        ),
        compiler_params=pltpu.CompilerParams(
            dimension_semantics=("parallel", "parallel"),
            vmem_limit_bytes=_VMEM_LIMIT_BYTES,
        ),
        cost_estimate=cost,
    )(x_flat, loc_k, scale_k)

    return out_flat.reshape(N, C, H, W)


def _actnorm_2d(x, loc, scale):
    # Dedicated (N, C) path: C on the lane axis, never go through HW=1.
    N, C = x.shape
    itemsize = jnp.dtype(x.dtype).itemsize

    loc_k = loc.reshape(1, C).astype(x.dtype)
    scale_k = scale.reshape(1, C).astype(x.dtype)

    tn = _choose_2d_rows(N, C, itemsize)
    grid = (pl.cdiv(N, tn),)

    cost = pl.CostEstimate(
        flops=2 * N * C,
        transcendentals=0,
        bytes_accessed=2 * N * C * itemsize + 2 * C * itemsize,
    )

    return pl.pallas_call(
        _actnorm_kernel,
        out_shape=jax.ShapeDtypeStruct((N, C), x.dtype),
        grid_spec=pltpu.PrefetchScalarGridSpec(
            num_scalar_prefetch=0,
            grid=grid,
            in_specs=[
                pl.BlockSpec((tn, C), lambda n: (n, 0)),
                pl.BlockSpec((1, C), lambda n: (0, 0)),
                pl.BlockSpec((1, C), lambda n: (0, 0)),
            ],
            out_specs=pl.BlockSpec((tn, C), lambda n: (n, 0)),
        ),
        compiler_params=pltpu.CompilerParams(
            dimension_semantics=("parallel",),
            vmem_limit_bytes=_VMEM_LIMIT_BYTES,
        ),
        cost_estimate=cost,
    )(x, loc_k, scale_k)


def actnorm_forward(x, loc, scale, *, logdet=False):
    """ActNorm forward (inference path).

    x:     (N, C, H, W) or (N, C)
    loc:   (1, C, 1, 1)
    scale: (1, C, 1, 1)
    """
    if x.ndim == 2:
        h = _actnorm_2d(x, loc, scale)
        H = W = 1
        N = x.shape[0]
    else:
        N, _, H, W = x.shape
        h = _actnorm_4d(x, loc, scale)

    if logdet:
        # Tiny per-parameter reduction: plain-JAX glue.
        log_abs = jnp.log(jnp.abs(scale))
        ld = (H * W) * jnp.sum(log_abs)
        ld = ld.astype(x.dtype) * jnp.ones((N,), dtype=x.dtype)
        return h, ld
    return h

# TODO(synk): data-dependent `initialize()` (training-time stats) and the
# `reverse()` path are host/control-flow concerns, not implemented here.


if __name__ == "__main__":
    key = jax.random.PRNGKey(0)
    N, C, H, W = 2, 4, 16, 16
    kx, kl, ks = jax.random.split(key, 3)

    x = jax.random.normal(kx, (N, C, H, W), dtype=jnp.float32)
    # Deterministic synthetic parameters (module __init__ shapes: (1, C, 1, 1)).
    loc = jax.random.normal(kl, (1, C, 1, 1), dtype=jnp.float32) * 0.1
    scale = 1.0 + jax.random.normal(ks, (1, C, 1, 1), dtype=jnp.float32) * 0.05

    # 4-D path + logdet.
    h, ld = actnorm_forward(x, loc, scale, logdet=True)
    jax.block_until_ready((h, ld))
    ref = scale * (x + loc)
    ref_ld = (H * W) * jnp.sum(jnp.log(jnp.abs(scale))) * jnp.ones((N,), x.dtype)
    assert jnp.allclose(h, ref, atol=1e-6, rtol=1e-6)
    assert jnp.allclose(ld, ref_ld, atol=1e-5, rtol=1e-5)

    # 2-D (squeeze) path: dedicated lane-dense kernel.
    x2 = jax.random.normal(kx, (N, C), dtype=jnp.float32)
    h2 = actnorm_forward(x2, loc, scale, logdet=False)
    jax.block_until_ready(h2)
    ref2 = (scale * (x2[:, :, None, None] + loc))[:, :, 0, 0]
    assert jnp.allclose(h2, ref2, atol=1e-6, rtol=1e-6)

    # Non-128-multiple spatial extent (exercises the full-HW fallback tiling).
    C3, H3, W3 = 8, 7, 7
    x3 = jax.random.normal(kx, (N, C3, H3, W3), dtype=jnp.float32)
    loc3 = jax.random.normal(kl, (1, C3, 1, 1), dtype=jnp.float32) * 0.1
    scale3 = 1.0 + jax.random.normal(ks, (1, C3, 1, 1), dtype=jnp.float32) * 0.05
    h3 = actnorm_forward(x3, loc3, scale3, logdet=False)
    jax.block_until_ready(h3)
    ref3 = scale3 * (x3 + loc3)
    assert jnp.allclose(h3, ref3, atol=1e-6, rtol=1e-6)

    print("KERNEL_OK")
</pallas_src>

<mosaic_0001>
module attributes {stable_mosaic.version = 11 : i64} {
  func.func @_actnorm_kernel(%arg0: i32, %arg1: i32, %arg2: memref<2x4x256xf32, #tpu.memory_space<vmem>>, %arg3: memref<1x4x1xf32, #tpu.memory_space<vmem>>, %arg4: memref<1x4x1xf32, #tpu.memory_space<vmem>>, %arg5: memref<2x4x256xf32, #tpu.memory_space<vmem>>) attributes {dimension_semantics = [#tpu.dimension_semantics<parallel>, #tpu.dimension_semantics<parallel>], iteration_bounds = array<i64: 1, 1>, scalar_prefetch = 0 : i64, scratch_operands = 0 : i64, tpu.core_type = #tpu.core_type<tc>, window_params = [{transform_indices = @transform_0, window_bounds = array<i64: 2, 4, 256>}, {pipeline_mode = #tpu.pipeline_mode<synchronous>, transform_indices = @transform_1, window_bounds = array<i64: 1, 4, 1>}, {pipeline_mode = #tpu.pipeline_mode<synchronous>, transform_indices = @transform_2, window_bounds = array<i64: 1, 4, 1>}, {transform_indices = @transform_3, window_bounds = array<i64: 2, 4, 256>}]} {
    %c0 = arith.constant 0 : index
    %c0_0 = arith.constant 0 : index
    %c0_1 = arith.constant 0 : index
    %0 = vector.load %arg4[%c0, %c0_0, %c0_1] : memref<1x4x1xf32, #tpu.memory_space<vmem>>, vector<1x4x1xf32>
    %c0_2 = arith.constant 0 : index
    %c0_3 = arith.constant 0 : index
    %c0_4 = arith.constant 0 : index
    %1 = vector.load %arg2[%c0_2, %c0_3, %c0_4] : memref<2x4x256xf32, #tpu.memory_space<vmem>>, vector<2x4x256xf32>
    %c0_5 = arith.constant 0 : index
    %c0_6 = arith.constant 0 : index
    %c0_7 = arith.constant 0 : index
    %2 = vector.load %arg3[%c0_5, %c0_6, %c0_7] : memref<1x4x1xf32, #tpu.memory_space<vmem>>, vector<1x4x1xf32>
    %3 = vector.broadcast %2 : vector<1x4x1xf32> to vector<2x4x256xf32>
    %4 = arith.addf %1, %3 : vector<2x4x256xf32>
    %5 = vector.broadcast %0 : vector<1x4x1xf32> to vector<2x4x256xf32>
    %6 = arith.mulf %5, %4 : vector<2x4x256xf32>
    %c0_8 = arith.constant 0 : index
    %c0_9 = arith.constant 0 : index
    %c0_10 = arith.constant 0 : index
    %7 = vector.load %arg5[%c0_8, %c0_9, %c0_10] : memref<2x4x256xf32, #tpu.memory_space<vmem>>, vector<2x4x256xf32>
    tpu.vector_store %arg5[%c0_8, %c0_9, %c0_10], %6 {strides = array<i32>} : memref<2x4x256xf32, #tpu.memory_space<vmem>>, vector<2x4x256xf32>,
    return
  }
  func.func @transform_0(%arg0: i32, %arg1: i32) -> (i32, i32, i32) {
    %c0_i32 = arith.constant 0 : i32
    %c0_i32_0 = arith.constant 0 : i32
    return %arg0, %c0_i32, %arg1 : i32, i32, i32
  }
  func.func @transform_1(%arg0: i32, %arg1: i32) -> (i32, i32, i32) {
    %c0_i32 = arith.constant 0 : i32
    %c0_i32_0 = arith.constant 0 : i32
    %c0_i32_1 = arith.constant 0 : i32
    %c0_i32_2 = arith.constant 0 : i32
    return %c0_i32, %c0_i32_0, %c0_i32_1 : i32, i32, i32
  }
  func.func @transform_2(%arg0: i32, %arg1: i32) -> (i32, i32, i32) {
    %c0_i32 = arith.constant 0 : i32
    %c0_i32_0 = arith.constant 0 : i32
    %c0_i32_1 = arith.constant 0 : i32
    %c0_i32_2 = arith.constant 0 : i32
    return %c0_i32, %c0_i32_0, %c0_i32_1 : i32, i32, i32
  }
  func.func @transform_3(%arg0: i32, %arg1: i32) -> (i32, i32, i32) {
    %c0_i32 = arith.constant 0 : i32
    %c0_i32_0 = arith.constant 0 : i32
    return %arg0, %c0_i32, %arg1 : i32, i32, i32
  }
}

</mosaic_0001>

<bundles_post_ra>
// kernel: tpu_custom_call.1
= control target key start
LH: loop header
LB: loop body
LE: loop exit
PB: predicated region body
PF: predicated region fallthrough
CT: control target
= control target key end

     0   :  { %8 = vsyncpa [#allocation3], 0  ;;  %s206_s0 = inlined_call_operand.hbm [shape: f32[2,4,256], index: 0, kind: input, shape index: {}]   ;;  %s207_s1 = inlined_call_operand.vmem [shape: f32[1,4,1], index: 1, kind: input, shape index: {}]   ;;  %s208_s2 = inlined_call_operand.vmem [shape: f32[1,4,1], index: 2, kind: input, shape index: {}]   ;;  %s209_s3 = inlined_call_operand.hbm [shape: f32[2,4,256], index: 3, kind: output, shape index: {}]  }
   0x1   :  { %9 = vsyncpa [#allocation4], 0  ;;  %s144_s12 = smov [#allocation2]   ;;  %s96_s16 = scalar_lea.hbm %s206_s0, 256 }
   0x2   :  { %s15_s13 = sshll.u32 %s144_s12, 4  ;;  %p97_p0 = scmp.ne.s32.totalorder %s206_s0, %s96_s16  ;;  %s16_s13 = int_to_ptr.vmem [resolvable:$true] %s15_s13 }
   0x3   :  { %p100_p1 = scmp.lt.u32.totalorder %s96_s16, %s206_s0 }
   0x5   :  { %p102_p2 = pnand %p100_p1, %p97_p0 }
   0x7   :  { %105 = shalt.err (!%p102_p2)
}
   0x8   :  { %s106_s21 = scalar_lea.vmem %s16_s13, 256  ;;  %p111_p4 = scmp.lt.s32.totalorder %s16_s13, %s16_s13 }
   0x9   :  { %p107_p3 = scmp.ne.s32.totalorder %s16_s13, %s106_s21  ;;  %p112_p5 = scmp.lt.s32.totalorder %s106_s21, %s106_s21 }
   0xb   :  { %p113_p6 = por %p112_p5, %p111_p4 }
   0xd   :  { %p114_p7 = pnand %p113_p6, %p107_p3 }
   0xf   :  { %117 = shalt.err (!%p114_p7)
}
  0x10   :  { %s145_s22 = smov 128   ;;  %s146_s23 = smov 8  }
  0x11   :  { %21 = dma.hbm_to_vmem [thread:$0]  %s206_s0, 256, %s16_s13, [#allocation3], %s145_s22, %s145_s22, %s146_s23  }
  0x12   :  { %140 = dma.done.wait [#allocation3], 256  }
  0x13   :  { %141 = vsyncadd [#allocation3], 4294967040  ;;  %v147_v0 = vmov 0   ;;  %v32_v1 = vld [vmem:[%s207_s1] sm:$0xf]  ;;  %v40_v5 = vlaneseq  ;;  %v31_v11 = vld [vmem:[#allocation2 + $0x8] sm:$0xff] }
  0x14   :  { %95 = vset.pattern.permute.xlu0 %v147_v0  ;;  %v29_v2 = vld [vmem:[%s208_s2] sm:$0xf]  ;;  %v148_v3 = vmov 839922192   ;;  %s149_s0 = smov [#allocation5]  }
  0x15   :  { %35 = vperm.xlu0 %95, %v32_v1   ;;  %v38_v4 = vunpack.c.l.s4 %v148_v3  ;;  %v41_v7 = vshrl.u32 %v40_v5, 7  ;;  %v30_v10 = vld [vmem:[#allocation2] sm:$0xff]  ;;  %s77_s1 = sshll.u32 %s149_s0, 4  ;;  %s78_s1 = int_to_ptr.vmem [resolvable:$true] %s77_s1 }
  0x16   :  { %s118_s2 = scalar_lea.vmem %s78_s1, 256  ;;  %p123_p9 = scmp.lt.s32.totalorder %s78_s1, %s78_s1 }
  0x17   :  { %v39_v6 = vunpack.c.0.s8 %v38_v4  ;;  %p119_p8 = scmp.ne.s32.totalorder %s78_s1, %s118_s2  ;;  %p124_p10 = scmp.lt.s32.totalorder %s118_s2, %s118_s2 }
  0x19   :  { %49 = vperm.xlu0 %95, %v29_v2   ;;  %v42_v8 = vsub.s32 %v39_v6, %v41_v7  ;;  %p125_p11 = por %p124_p10, %p123_p9 }
  0x1b   :  { %p126_p12 = pnand %p125_p11, %p119_p8 }
  0x94   :  { %v36_v9 = vpop.permute.xlu0 %35 }
  0x95   :  { %v43_v12 = vrot.slane %v36_v9, %v42_v8 }
  0x97   :  { %v45_v13 = vadd.f32 %v43_v12, %v30_v10  ;;  %v46_v14 = vadd.f32 %v43_v12, %v31_v11 }
  0x98   :  { %v50_v15 = vpop.permute.xlu0 %49 }
  0x99   :  { %v54_v16 = vcombine.high %v45_v13, %v45_v13  ;;  %v55_v17 = vcombine.high %v46_v14, %v46_v14  ;;  %v58_v18 = vmul.f32 %v50_v15, %v45_v13  ;;  %v60_v20 = vmul.f32 %v50_v15, %v46_v14 }
  0x9b   :  { %v59_v19 = vmul.f32 %v54_v16, %v50_v15  ;;  %v61_v21 = vmul.f32 %v55_v17, %v50_v15 }
  0x9d   :  { %v66_v22 = vcombine.low %v58_v18, %v59_v19  ;;  %v67_v23 = vcombine.low %v60_v20, %v61_v21 }
  0x9f   :  { %70 = vst [vmem:[#allocation5] sm:$0xff] %v66_v22  ;;  %71 = vst [vmem:[#allocation5 + $0x8] sm:$0xff] %v67_v23 }
  0xa0   :  { %129 = shalt.err (!%p126_p12)
}
  0xa1   :  { %s130_s5 = scalar_lea.hbm %s209_s3, 256 }
  0xa2   :  { %p131_p13 = scmp.ne.s32.totalorder %s209_s3, %s130_s5  ;;  %p134_p0 = scmp.lt.u32.totalorder %s130_s5, %s209_s3 }
  0xa4   :  { %p136_p1 = pnand %p134_p0, %p131_p13 }
  0xa6   :  { %139 = shalt.err (!%p136_p1)
}
  0xa7   :  { %83 = dma.vmem_to_hbm [thread:$0]  %s78_s1, 256, %s209_s3, [#allocation4], %s145_s22, %s145_s22, %s146_s23  }
  0xa8   :  { %142 = dma.done.wait [#allocation4], 256  }
  0xa9   :  { %143 = vsyncadd [#allocation4], 4294967040 }
  0xaa   :  { %87 = vsyncpa [#allocation3], 1 }
  0xab   :  { %88 = vsyncpa [#allocation4], 1 }

</bundles_post_ra>
